<compile_context>
chip_gen: v5e
topology: v5e:2x2
jax: 0.10.0
libtpu: 0.0.40
codegen_flags: <defaults>
</compile_context>

<pallas_src>
import functools
import math

import jax
import jax.numpy as jnp
import numpy as np
from jax import lax
from jax.experimental import pallas as pl
from jax.experimental.pallas import tpu as pltpu


def _vmem_limit_bytes():
    """Scoped-VMEM budget sized from the running chip (v7x: ~48 MiB, v5e/v6e: ~96 MiB)."""
    cap = 64 * 1024 * 1024
    try:
        info = pltpu.get_tpu_info()
        cap = getattr(info, "vmem_capacity_bytes", cap)
    except Exception:
        pass
    return int(min(cap * 3 // 4, 100 * 1024 * 1024))


def _pick_div_tile(n, cap, align):
    """Largest tile <= cap that divides n and is a multiple of `align`;
    n itself when n <= cap (full-dim blocks are always legal)."""
    if n <= cap:
        return n
    start = cap - (cap % align)
    for t in range(start, 0, -align):
        if n % t == 0:
            return t
    return n


def _pick_head_group(nh, d, H):
    """Smallest head-group size G (G | nh) whose width G*d is lane dense."""
    for G in range(1, nh + 1):
        if nh % G:
            continue
        w = G * d
        if w % 128 == 0 or w == H:
            return G
    return nh


# ----------------------------------------------------------------------------
# Kernel 1: fused Q/K/V projections, tiled over (batch, T tiles, out-col tiles).
#   q = (x @ WqT + bq) / sqrt(head_dim);  k = x @ WkT + bk;  v = x @ WvT + bv
# ----------------------------------------------------------------------------
def _qkv_proj_kernel(x_ref, wq_ref, bq_ref, wk_ref, bk_ref, wv_ref, bv_ref,
                     q_ref, k_ref, v_ref, *, inv_sqrt_d):
    x = x_ref[...]                                               # (TM, H) bf16
    q = jnp.dot(x, wq_ref[...], preferred_element_type=jnp.float32) + bq_ref[...]
    q_ref[...] = (q * inv_sqrt_d).astype(q_ref.dtype)
    k = jnp.dot(x, wk_ref[...], preferred_element_type=jnp.float32) + bk_ref[...]
    k_ref[...] = k.astype(k_ref.dtype)
    v = jnp.dot(x, wv_ref[...], preferred_element_type=jnp.float32) + bv_ref[...]
    v_ref[...] = v.astype(v_ref.dtype)


# ----------------------------------------------------------------------------
# Kernel 2: attention for one (batch, head-group, query-tile).  K/V blocks keep
# a constant index over the innermost query-tile axis (stay resident in VMEM).
# Per-head results are stored directly into the lane-dense output slab.
# ----------------------------------------------------------------------------
def _make_attn_kernel(G, d, have_mask, have_hmask, emit_w):
    def kernel(*refs):
        it = iter(refs)
        q_ref = next(it)
        k_ref = next(it)
        v_ref = next(it)
        mask_ref = next(it) if have_mask else None
        hmask_ref = next(it) if have_hmask else None
        out_ref = next(it)
        w_ref = next(it) if emit_w else None

        for h in range(G):                       # static unroll over heads
            cols = slice(h * d, (h + 1) * d)
            q = q_ref[:, cols]                   # (TQ, d) bf16
            k = k_ref[:, cols]                   # (S, d) bf16
            v = v_ref[:, cols]                   # (S, d) bf16
            # q @ k^T without materializing a transpose.
            scores = lax.dot_general(q, k, (((1,), (1,)), ((), ())),
                                     preferred_element_type=jnp.float32)  # (TQ,S)
            if mask_ref is not None:
                scores = scores + mask_ref[h]    # (TQ,S) + (1,S) additive mask
            hm = hmask_ref[h, 0] if hmask_ref is not None else None
            if w_ref is not None:
                w_ref[h] = (scores * hm) if hm is not None else scores
            m = jnp.max(scores, axis=-1, keepdims=True)
            p = jnp.exp(scores - m)
            denom = jnp.sum(p, axis=-1, keepdims=True)
            probs = p * pl.reciprocal(denom, approx=True)   # EUP reciprocal
            if hm is not None:
                probs = probs * hm
            out_ref[:, cols] = jnp.dot(probs.astype(v.dtype), v,
                                       preferred_element_type=jnp.float32
                                       ).astype(out_ref.dtype)
    return kernel


# ----------------------------------------------------------------------------
# Kernel 3: output projection, tiled over (batch, T tiles, out-col tiles).
# ----------------------------------------------------------------------------
def _out_proj_kernel(x_ref, w_ref, b_ref, o_ref):
    o_ref[...] = (jnp.dot(x_ref[...], w_ref[...],
                          preferred_element_type=jnp.float32)
                  + b_ref[...]).astype(o_ref.dtype)


# ----------------------------------------------------------------------------
# Python wrapper.
# ----------------------------------------------------------------------------
def prophetnet_attention(hidden_states, params, num_attn_heads,
                         attention_mask=None, layer_head_mask=None,
                         output_attentions=False):
    B, T, H = hidden_states.shape
    nh = num_attn_heads
    d = H // nh
    S = T  # self-attention

    f32, bf16 = jnp.float32, jnp.bfloat16

    vmem_limit = _vmem_limit_bytes()
    big_vmem = vmem_limit >= 80 * 1024 * 1024
    tn_cap = 1024 if big_vmem else 512      # output-column tile cap per chip
    tm_cap = 512                             # projection T tile cap
    tq_cap = 256                             # attention query tile cap

    # One-time relayout: PyTorch Linear stores (out, in); pre-transpose to
    # (in, out) and cast to bf16 so kernels contract on dim 0 (no in-kernel .T).
    wq_t = params["wq"].T.astype(bf16)
    wk_t = params["wk"].T.astype(bf16)
    wv_t = params["wv"].T.astype(bf16)
    wo_t = params["wo"].T.astype(bf16)
    bq = params["bq"].reshape(1, H).astype(f32)
    bk = params["bk"].reshape(1, H).astype(f32)
    bv = params["bv"].reshape(1, H).astype(f32)
    bo = params["bo"].reshape(1, H).astype(f32)
    x_bf = hidden_states.astype(bf16)

    # --- fused Q/K/V projections (grid over batch x T tiles x out-col tiles) --
    tn = _pick_div_tile(H, tn_cap, 128)
    tm = _pick_div_tile(T, tm_cap, 8)
    x_spec = pl.BlockSpec((None, tm, H), lambda b, ti, ni: (b, ti, 0))
    w_spec = pl.BlockSpec((H, tn), lambda b, ti, ni: (0, ni))
    b_spec = pl.BlockSpec((1, tn), lambda b, ti, ni: (0, ni))
    proj_out_spec = pl.BlockSpec((None, tm, tn), lambda b, ti, ni: (b, ti, ni))
    proj_cp = pltpu.CompilerParams(
        dimension_semantics=("parallel", "parallel", "parallel"),
        vmem_limit_bytes=vmem_limit)

    q, k, v = pl.pallas_call(
        functools.partial(_qkv_proj_kernel, inv_sqrt_d=1.0 / math.sqrt(d)),
        grid=(B, T // tm, H // tn),
        in_specs=[x_spec, w_spec, b_spec, w_spec, b_spec, w_spec, b_spec],
        out_specs=(proj_out_spec, proj_out_spec, proj_out_spec),
        out_shape=(jax.ShapeDtypeStruct((B, T, H), bf16),) * 3,
        compiler_params=proj_cp,
    )(x_bf, wq_t, bq, wk_t, bk, wv_t, bv)

    # --- attention (grid over batch x head-groups x query-tiles) -------------
    have_mask = attention_mask is not None
    have_hmask = layer_head_mask is not None

    G = _pick_head_group(nh, d, H)   # heads per grid step (lane-dense slab)
    ng = nh // G
    gw = G * d
    tq = _pick_div_tile(T, tq_cap, 8)

    q_spec = pl.BlockSpec((None, tq, gw), lambda b, g, qi: (b, qi, g))
    kv_spec = pl.BlockSpec((None, S, gw), lambda b, g, qi: (b, 0, g))
    attn_out_spec = pl.BlockSpec((None, tq, gw), lambda b, g, qi: (b, qi, g))

    in_specs = [q_spec, kv_spec, kv_spec]
    in_arrays = [q, k, v]
    if have_mask:
        in_specs.append(pl.BlockSpec((None, G, 1, S), lambda b, g, qi: (b, g, 0, 0)))
        in_arrays.append(attention_mask.astype(f32))
    if have_hmask:
        in_specs.append(pl.BlockSpec((G, 1), lambda b, g, qi: (g, 0),
                                     memory_space=pltpu.MemorySpace.SMEM))
        in_arrays.append(layer_head_mask.reshape(nh, 1).astype(f32))

    attn_cp = pltpu.CompilerParams(
        dimension_semantics=("parallel", "parallel", "parallel"),
        vmem_limit_bytes=vmem_limit)
    attn_kernel = _make_attn_kernel(G, d, have_mask, have_hmask, output_attentions)

    if output_attentions:
        w_out_spec = pl.BlockSpec((None, G, tq, S), lambda b, g, qi: (b, g, qi, 0))
        attn_out, attn_w = pl.pallas_call(
            attn_kernel,
            grid=(B, ng, T // tq),
            in_specs=in_specs,
            out_specs=(attn_out_spec, w_out_spec),
            out_shape=(jax.ShapeDtypeStruct((B, T, H), bf16),
                       jax.ShapeDtypeStruct((B, nh, T, S), f32)),
            compiler_params=attn_cp,
        )(*in_arrays)
    else:
        # inference path: no O(B*nh*T*S) weights writeback at all
        attn_w = None
        attn_out = pl.pallas_call(
            attn_kernel,
            grid=(B, ng, T // tq),
            in_specs=in_specs,
            out_specs=attn_out_spec,
            out_shape=jax.ShapeDtypeStruct((B, T, H), bf16),
            compiler_params=attn_cp,
        )(*in_arrays)

    # --- output projection (grid over batch x T tiles x out-col tiles) -------
    to = tn
    xo_spec = pl.BlockSpec((None, tm, H), lambda b, ti, ni: (b, ti, 0))
    wo_spec = pl.BlockSpec((H, to), lambda b, ti, ni: (0, ni))
    bo_spec = pl.BlockSpec((1, to), lambda b, ti, ni: (0, ni))
    out_spec = pl.BlockSpec((None, tm, to), lambda b, ti, ni: (b, ti, ni))

    out = pl.pallas_call(
        _out_proj_kernel,
        grid=(B, T // tm, H // to),
        in_specs=[xo_spec, wo_spec, bo_spec],
        out_specs=out_spec,
        out_shape=jax.ShapeDtypeStruct((B, T, H), f32),
        compiler_params=pltpu.CompilerParams(
            dimension_semantics=("parallel", "parallel", "parallel"),
            vmem_limit_bytes=vmem_limit),
    )(attn_out, wo_t, bo)

    past_key_value = None  # only populated for cross-attention in the PT module
    return out, attn_w, past_key_value


# ----------------------------------------------------------------------------
# Pure-JAX fp32 reference (mirrors the PyTorch forward, eval mode).
# ----------------------------------------------------------------------------
def reference(hidden_states, params, nh, attention_mask=None, layer_head_mask=None):
    B, T, H = hidden_states.shape
    d = H // nh
    lin = lambda x, w, b: x @ w.T + b
    q = lin(hidden_states, params["wq"], params["bq"]) / math.sqrt(d)
    k = lin(hidden_states, params["wk"], params["bk"])
    v = lin(hidden_states, params["wv"], params["bv"])
    sh = lambda x: x.reshape(B, T, nh, d).transpose(0, 2, 1, 3)
    q, k, v = sh(q), sh(k), sh(v)
    scores = jnp.einsum("bhtd,bhsd->bhts", q, k)
    if attention_mask is not None:
        scores = scores + attention_mask
    w_reshaped = scores
    probs = jax.nn.softmax(scores, axis=-1)
    if layer_head_mask is not None:
        probs = layer_head_mask.reshape(1, nh, 1, 1) * probs
        w_reshaped = layer_head_mask.reshape(1, nh, 1, 1) * w_reshaped
    out = jnp.einsum("bhts,bhsd->bhtd", probs, v)
    out = out.transpose(0, 2, 1, 3).reshape(B, T, H)
    out = lin(out, params["wo"], params["bo"])
    return out, w_reshaped


if __name__ == "__main__":
    B, T, H, NH = 2, 8, 32, 4

    key = jax.random.PRNGKey(0)
    ks = jax.random.split(key, 9)
    scale = 0.05
    params = {
        "wq": scale * jax.random.normal(ks[0], (H, H), jnp.float32),
        "bq": scale * jax.random.normal(ks[1], (H,), jnp.float32),
        "wk": scale * jax.random.normal(ks[2], (H, H), jnp.float32),
        "bk": scale * jax.random.normal(ks[3], (H,), jnp.float32),
        "wv": scale * jax.random.normal(ks[4], (H, H), jnp.float32),
        "bv": scale * jax.random.normal(ks[5], (H,), jnp.float32),
        "wo": scale * jax.random.normal(ks[6], (H, H), jnp.float32),
        "bo": scale * jax.random.normal(ks[7], (H,), jnp.float32),
    }
    hidden_states = jax.random.normal(ks[8], (B, T, H), jnp.float32)
    # additive attention mask (B, NH, 1, S): mask out the last source position
    attention_mask = jnp.zeros((B, NH, 1, T), jnp.float32).at[:, :, :, -1].set(-1e9)
    layer_head_mask = jnp.array([1.0, 0.5, 1.0, 0.0], jnp.float32)

    # 1) full path: masks + attention-weights output
    out, attn_w, pkv = prophetnet_attention(
        hidden_states, params, NH,
        attention_mask=attention_mask,
        layer_head_mask=layer_head_mask,
        output_attentions=True,
    )
    out = jax.block_until_ready(out)
    attn_w = jax.block_until_ready(attn_w)

    ref_out, ref_w = reference(hidden_states, params, NH,
                               attention_mask, layer_head_mask)
    # bf16 MXU inputs + approximate reciprocal -> relaxed tolerances vs fp32 ref
    np.testing.assert_allclose(np.asarray(out), np.asarray(ref_out),
                               rtol=2e-2, atol=2e-2)
    np.testing.assert_allclose(np.asarray(attn_w), np.asarray(ref_w),
                               rtol=2e-2, atol=2e-2)
    assert out.shape == (B, T, H) and attn_w.shape == (B, NH, T, T)
    assert pkv is None

    # 2) inference path: no masks, no attention-weights writeback
    out_nw, attn_w_nw, _ = prophetnet_attention(
        hidden_states, params, NH,
        attention_mask=None,
        layer_head_mask=None,
        output_attentions=False,
    )
    out_nw = jax.block_until_ready(out_nw)
    assert attn_w_nw is None
    ref_out_nm, _ = reference(hidden_states, params, NH, None, None)
    np.testing.assert_allclose(np.asarray(out_nw), np.asarray(ref_out_nm),
                               rtol=2e-2, atol=2e-2)

    print("KERNEL_OK")
</pallas_src>

<mosaic_0001>
module attributes {stable_mosaic.version = 11 : i64} {
  func.func @_qkv_proj_kernel(%arg0: i32, %arg1: i32, %arg2: i32, %arg3: memref<1x8x32xbf16, #tpu.memory_space<vmem>>, %arg4: memref<32x32xbf16, #tpu.memory_space<vmem>>, %arg5: memref<1x32xf32, #tpu.memory_space<vmem>>, %arg6: memref<32x32xbf16, #tpu.memory_space<vmem>>, %arg7: memref<1x32xf32, #tpu.memory_space<vmem>>, %arg8: memref<32x32xbf16, #tpu.memory_space<vmem>>, %arg9: memref<1x32xf32, #tpu.memory_space<vmem>>, %arg10: memref<1x8x32xbf16, #tpu.memory_space<vmem>>, %arg11: memref<1x8x32xbf16, #tpu.memory_space<vmem>>, %arg12: memref<1x8x32xbf16, #tpu.memory_space<vmem>>) attributes {dimension_semantics = [#tpu.dimension_semantics<parallel>, #tpu.dimension_semantics<parallel>, #tpu.dimension_semantics<parallel>], iteration_bounds = array<i64: 2, 1, 1>, scalar_prefetch = 0 : i64, scratch_operands = 0 : i64, tpu.core_type = #tpu.core_type<tc>, window_params = [{transform_indices = @transform_0, window_bounds = array<i64: 1, 8, 32>}, {transform_indices = @transform_1, window_bounds = array<i64: 32, 32>}, {transform_indices = @transform_2, window_bounds = array<i64: 1, 32>}, {transform_indices = @transform_3, window_bounds = array<i64: 32, 32>}, {transform_indices = @transform_4, window_bounds = array<i64: 1, 32>}, {transform_indices = @transform_5, window_bounds = array<i64: 32, 32>}, {transform_indices = @transform_6, window_bounds = array<i64: 1, 32>}, {transform_indices = @transform_7, window_bounds = array<i64: 1, 8, 32>}, {transform_indices = @transform_8, window_bounds = array<i64: 1, 8, 32>}, {transform_indices = @transform_9, window_bounds = array<i64: 1, 8, 32>}]} {
    %c0 = arith.constant 0 : index
    %c0_0 = arith.constant 0 : index
    %c0_1 = arith.constant 0 : index
    %0 = vector.load %arg3[%c0, %c0_0, %c0_1] : memref<1x8x32xbf16, #tpu.memory_space<vmem>>, vector<1x8x32xbf16>
    %1 = vector.shape_cast %0 : vector<1x8x32xbf16> to vector<8x32xbf16>
    %c0_2 = arith.constant 0 : index
    %c0_3 = arith.constant 0 : index
    %2 = vector.load %arg4[%c0_2, %c0_3] : memref<32x32xbf16, #tpu.memory_space<vmem>>, vector<32x32xbf16>
    %cst = arith.constant dense<0.000000e+00> : vector<8x32xf32>
    %3 = tpu.matmul %1, %2, %cst {dimension_numbers = #tpu.dot_dimension_numbers<[1], [0], [0], [1], [0, 0, 1, 1], [], []>} : vector<8x32xbf16>, vector<32x32xbf16>, vector<8x32xf32> -> vector<8x32xf32>
    %c0_4 = arith.constant 0 : index
    %c0_5 = arith.constant 0 : index
    %4 = vector.load %arg5[%c0_4, %c0_5] : memref<1x32xf32, #tpu.memory_space<vmem>>, vector<1x32xf32>
    %5 = vector.broadcast %4 : vector<1x32xf32> to vector<8x32xf32>
    %6 = arith.addf %3, %5 : vector<8x32xf32>
    %cst_6 = arith.constant 0.353553385 : f32
    %7 = vector.broadcast %cst_6 : f32 to vector<8x32xf32>
    %8 = arith.mulf %6, %7 : vector<8x32xf32>
    %9 = arith.truncf %8 : vector<8x32xf32> to vector<8x32xbf16>
    %c0_7 = arith.constant 0 : index
    %c0_8 = arith.constant 0 : index
    %c0_9 = arith.constant 0 : index
    %10 = vector.load %arg10[%c0_7, %c0_8, %c0_9] : memref<1x8x32xbf16, #tpu.memory_space<vmem>>, vector<1x8x32xbf16>
    %11 = vector.shape_cast %10 : vector<1x8x32xbf16> to vector<8x32xbf16>
    %12 = vector.shape_cast %9 : vector<8x32xbf16> to vector<1x8x32xbf16>
    tpu.vector_store %arg10[%c0_7, %c0_8, %c0_9], %12 {strides = array<i32>} : memref<1x8x32xbf16, #tpu.memory_space<vmem>>, vector<1x8x32xbf16>,
    %c0_10 = arith.constant 0 : index
    %c0_11 = arith.constant 0 : index
    %13 = vector.load %arg6[%c0_10, %c0_11] : memref<32x32xbf16, #tpu.memory_space<vmem>>, vector<32x32xbf16>
    %cst_12 = arith.constant dense<0.000000e+00> : vector<8x32xf32>
    %14 = tpu.matmul %1, %13, %cst_12 {dimension_numbers = #tpu.dot_dimension_numbers<[1], [0], [0], [1], [0, 0, 1, 1], [], []>} : vector<8x32xbf16>, vector<32x32xbf16>, vector<8x32xf32> -> vector<8x32xf32>
    %c0_13 = arith.constant 0 : index
    %c0_14 = arith.constant 0 : index
    %15 = vector.load %arg7[%c0_13, %c0_14] : memref<1x32xf32, #tpu.memory_space<vmem>>, vector<1x32xf32>
    %16 = vector.broadcast %15 : vector<1x32xf32> to vector<8x32xf32>
    %17 = arith.addf %14, %16 : vector<8x32xf32>
    %18 = arith.truncf %17 : vector<8x32xf32> to vector<8x32xbf16>
    %c0_15 = arith.constant 0 : index
    %c0_16 = arith.constant 0 : index
    %c0_17 = arith.constant 0 : index
    %19 = vector.load %arg11[%c0_15, %c0_16, %c0_17] : memref<1x8x32xbf16, #tpu.memory_space<vmem>>, vector<1x8x32xbf16>
    %20 = vector.shape_cast %19 : vector<1x8x32xbf16> to vector<8x32xbf16>
    %21 = vector.shape_cast %18 : vector<8x32xbf16> to vector<1x8x32xbf16>
    tpu.vector_store %arg11[%c0_15, %c0_16, %c0_17], %21 {strides = array<i32>} : memref<1x8x32xbf16, #tpu.memory_space<vmem>>, vector<1x8x32xbf16>,
    %c0_18 = arith.constant 0 : index
    %c0_19 = arith.constant 0 : index
    %22 = vector.load %arg8[%c0_18, %c0_19] : memref<32x32xbf16, #tpu.memory_space<vmem>>, vector<32x32xbf16>
    %cst_20 = arith.constant dense<0.000000e+00> : vector<8x32xf32>
    %23 = tpu.matmul %1, %22, %cst_20 {dimension_numbers = #tpu.dot_dimension_numbers<[1], [0], [0], [1], [0, 0, 1, 1], [], []>} : vector<8x32xbf16>, vector<32x32xbf16>, vector<8x32xf32> -> vector<8x32xf32>
    %c0_21 = arith.constant 0 : index
    %c0_22 = arith.constant 0 : index
    %24 = vector.load %arg9[%c0_21, %c0_22] : memref<1x32xf32, #tpu.memory_space<vmem>>, vector<1x32xf32>
    %25 = vector.broadcast %24 : vector<1x32xf32> to vector<8x32xf32>
    %26 = arith.addf %23, %25 : vector<8x32xf32>
    %27 = arith.truncf %26 : vector<8x32xf32> to vector<8x32xbf16>
    %c0_23 = arith.constant 0 : index
    %c0_24 = arith.constant 0 : index
    %c0_25 = arith.constant 0 : index
    %28 = vector.load %arg12[%c0_23, %c0_24, %c0_25] : memref<1x8x32xbf16, #tpu.memory_space<vmem>>, vector<1x8x32xbf16>
    %29 = vector.shape_cast %28 : vector<1x8x32xbf16> to vector<8x32xbf16>
    %30 = vector.shape_cast %27 : vector<8x32xbf16> to vector<1x8x32xbf16>
    tpu.vector_store %arg12[%c0_23, %c0_24, %c0_25], %30 {strides = array<i32>} : memref<1x8x32xbf16, #tpu.memory_space<vmem>>, vector<1x8x32xbf16>,
    return
  }
  func.func @transform_0(%arg0: i32, %arg1: i32, %arg2: i32) -> (i32, i32, i32) {
    %c0_i32 = arith.constant 0 : i32
    %c0_i32_0 = arith.constant 0 : i32
    return %arg0, %arg1, %c0_i32 : i32, i32, i32
  }
  func.func @transform_1(%arg0: i32, %arg1: i32, %arg2: i32) -> (i32, i32) {
    %c0_i32 = arith.constant 0 : i32
    %c0_i32_0 = arith.constant 0 : i32
    return %c0_i32, %arg2 : i32, i32
  }
  func.func @transform_2(%arg0: i32, %arg1: i32, %arg2: i32) -> (i32, i32) {
    %c0_i32 = arith.constant 0 : i32
    %c0_i32_0 = arith.constant 0 : i32
    return %c0_i32, %arg2 : i32, i32
  }
  func.func @transform_3(%arg0: i32, %arg1: i32, %arg2: i32) -> (i32, i32) {
    %c0_i32 = arith.constant 0 : i32
    %c0_i32_0 = arith.constant 0 : i32
    return %c0_i32, %arg2 : i32, i32
  }
  func.func @transform_4(%arg0: i32, %arg1: i32, %arg2: i32) -> (i32, i32) {
    %c0_i32 = arith.constant 0 : i32
    %c0_i32_0 = arith.constant 0 : i32
    return %c0_i32, %arg2 : i32, i32
  }
  func.func @transform_5(%arg0: i32, %arg1: i32, %arg2: i32) -> (i32, i32) {
    %c0_i32 = arith.constant 0 : i32
    %c0_i32_0 = arith.constant 0 : i32
    return %c0_i32, %arg2 : i32, i32
  }
  func.func @transform_6(%arg0: i32, %arg1: i32, %arg2: i32) -> (i32, i32) {
    %c0_i32 = arith.constant 0 : i32
    %c0_i32_0 = arith.constant 0 : i32
    return %c0_i32, %arg2 : i32, i32
  }
  func.func @transform_7(%arg0: i32, %arg1: i32, %arg2: i32) -> (i32, i32, i32) {
    %c0_i32 = arith.constant 0 : i32
    return %arg0, %arg1, %arg2 : i32, i32, i32
  }
  func.func @transform_8(%arg0: i32, %arg1: i32, %arg2: i32) -> (i32, i32, i32) {
    %c0_i32 = arith.constant 0 : i32
    return %arg0, %arg1, %arg2 : i32, i32, i32
  }
  func.func @transform_9(%arg0: i32, %arg1: i32, %arg2: i32) -> (i32, i32, i32) {
    %c0_i32 = arith.constant 0 : i32
    return %arg0, %arg1, %arg2 : i32, i32, i32
  }
}

</mosaic_0001>

<bundles_post_ra>
// kernel: tpu_custom_call.1
= control target key start
LH: loop header
LB: loop body
LE: loop exit
PB: predicated region body
PF: predicated region fallthrough
CT: control target
= control target key end

     0   :  { %s1651_s0 = inlined_call_operand.hbm [shape: bf16[2,8,32], index: 0, kind: input, shape index: {}]   ;;  %s1652_s1 = inlined_call_operand.hbm [shape: bf16[32,32], index: 1, kind: input, shape index: {}]   ;;  %s1653_s2 = inlined_call_operand.vmem [shape: f32[1,32], index: 2, kind: input, shape index: {}]   ;;  %s1654_s3 = inlined_call_operand.hbm [shape: bf16[32,32], index: 3, kind: input, shape index: {}]   ;;  %s1655_s4 = inlined_call_operand.vmem [shape: f32[1,32], index: 4, kind: input, shape index: {}]   ;;  %s1656_s5 = inlined_call_operand.hbm [shape: bf16[32,32], index: 5, kind: input, shape index: {}]   ;;  %s1657_s6 = inlined_call_operand.vmem [shape: f32[1,32], index: 6, kind: input, shape index: {}]   ;;  %s1658_s7 = inlined_call_operand.hbm [shape: bf16[2,8,32], index: 7, kind: output, shape index: {0}]   ;;  %s1659_s8 = inlined_call_operand.hbm [shape: bf16[2,8,32], index: 8, kind: output, shape index: {1}]   ;;  %s1660_s9 = inlined_call_operand.hbm [shape: bf16[2,8,32], index: 9, kind: output, shape index: {2}]  }
   0x1   :  { %1663 = sst [smem:[#allocation20_spill]] %s1651_s0 }
   0x2   :  { %1664 = sst [smem:[#allocation21_spill]] %s1652_s1 }
   0x3   :  { %1665 = sst [smem:[#allocation22_spill]] %s1653_s2 }
   0x4   :  { %1666 = sst [smem:[#allocation23_spill]] %s1654_s3 }
   0x5   :  { %1667 = sst [smem:[#allocation24_spill]] %s1655_s4 }
   0x6   :  { %1668 = sst [smem:[#allocation25_spill]] %s1656_s5 }
   0x7   :  { %15 = vsyncpa [#allocation3], 0 }
   0x8   :  { %17 = vsyncpa [#allocation3 + $0x1], 0 }
   0x9   :  { %18 = vsyncpa [#allocation6], 0 }
   0xa   :  { %19 = vsyncpa [#allocation9], 0 }
   0xb   :  { %20 = vsyncpa [#allocation4], 0 }
   0xc   :  { %22 = vsyncpa [#allocation4 + $0x1], 0 }
   0xd   :  { %23 = vsyncpa [#allocation12], 0 }
   0xe   :  { %25 = vsyncpa [#allocation12 + $0x1], 0  ;;  %s1406_s30 = smov 0   ;;  %s1408_s10 = smov 0  }
   0xf   :  { %s1410_s11 = smov 0   ;;  %s1412_s12 = smov 0  }
  0x10   :  { %s1414_s13 = smov 0   ;;  %s1416_s14 = smov 0  }
  0x11 LB: > { %s1437_s15 = sadd.s32 4294967295, %s1349_s14   ;;  %p912_p0 = scmp.ge.s32.totalorder %s1349_s14, 1  ;;  %s1349_s14 = sphi %s1416_s14, %s31_s14   ;;  %s1345_s13 = sphi %s1414_s13, %s1688_s13   ;;  %s1341_s12 = sphi %s1412_s12, %s1687_s12   ;;  %s1337_s11 = sphi %s1410_s11, %s1686_s11   ;;  %s1333_s10 = sphi %s1408_s10, %s1685_s10   ;;  %s1329_s30 = sphi %s1406_s30, %s1684_s30  }
  0x12   : > { %p73_p1 = scmp.eq.s32.totalorder %s1437_s15, 0  ;;  %p329_p2 = scmp.lt.s32.totalorder %s1349_s14, 3 }
  0x13   : > { %s1669_s1 = sld [smem:[#allocation21_spill]]  ;;  %s1351_s20 = smov [#allocation5]  }
  0x14   : > { %p1445_p3 = pnand %p912_p0, %p329_p2  ;;  %s344_s21 = sshll.u32 %s1351_s20, 4  ;;  %s345_s21 = int_to_ptr.vmem [resolvable:$true] %s344_s21 }
  0x15   : > { %p919_p6 = scmp.ge.s32.totalorder %s1349_s14, 2  ;;  %s1672_s3 = sld [smem:[#allocation23_spill]] }
  0x16   : > { %p991_p4 = pneg %p1445_p3  ;;  %s1352_s26 = smov 64  }
  0x17   : > { %s1353_s27 = smov 4   ;;  %s1354_s28 = smov [#allocation7]  }
  0x18   : > { %p1453_p5 = pnand %p991_p4, %p73_p1  ;;  %s366_s29 = sshll.u32 %s1354_s28, 4  ;;  %s367_s29 = int_to_ptr.vmem [resolvable:$true] %s366_s29 }
  0x19   : > { %s342_s18 = sshll.u32 %s1669_s1, 4  ;;  %s1673_s5 = sld [smem:[#allocation25_spill]]  ;;  %s343_s18 = int_to_ptr.hbm [resolvable:$true] %s342_s18 }
  0x1a   : > { %994 = dma.hbm_to_vmem [thread:$0]  (!%p1453_p5), %s343_s18, 256, %s345_s21, [#allocation6], %s1352_s26, %s1352_s26, %s1353_s27  }
  0x1b   : > { %s364_s25 = sshll.u32 %s1672_s3, 4  ;;  %s1355_s23 = smov [#allocation8]   ;;  %s365_s25 = int_to_ptr.hbm [resolvable:$true] %s364_s25 }
  0x1c   : > { %997 = dma.hbm_to_vmem [thread:$0]  (!%p1453_p5), %s365_s25, 256, %s367_s29, [#allocation6], %s1352_s26, %s1352_s26, %s1353_s27  }
  0x1d   : > { %s388_s24 = sshll.u32 %s1355_s23, 4  ;;  %s1661_s18 = sadd.s32 4294967294, %s1349_s14   ;;  %s389_s24 = int_to_ptr.vmem [resolvable:$true] %s388_s24 }
  0x1e   : > { %s50_s21 = sadd.s32 1, %s1345_s13  ;;  %s59_s28 = sadd.s32 1, %s1337_s11 }
  0x1f   : > { %s386_s20 = sshll.u32 %s1673_s5, 4  ;;  %p52_p7 = scmp.ge.s32.totalorder %s50_s21, 2  ;;  %s387_s20 = int_to_ptr.hbm [resolvable:$true] %s386_s20 }
  0x20   : > { %1000 = dma.hbm_to_vmem [thread:$0]  (!%p1453_p5), %s387_s20, 256, %s389_s24, [#allocation9], %s1352_s26, %s1352_s26, %s1353_s27  }
  0x21   : > { %p66_p8 = scmp.ne.s32.totalorder %s1337_s11, %s1333_s10  ;;  %p67_p9 = scmp.eq.s32.totalorder %s1349_s14, 0 }
  0x22   : > { %p72_p10 = scmp.ne.s32.totalorder %s1333_s10, %s1329_s30  ;;  %s1690_s21 = smov (%p52_p7, %s50_s21), 0 }
  0x23   : > { %1674 = sst [smem:[#allocation19_spill]] %s1690_s21  ;;  %p1480_p11 = por %p67_p9, %p66_p8 }
  0x24   : > { %p1486_p12 = por %p73_p1, %p72_p10  ;;  %s54_s26 = ssub.s32 %s1345_s13, %s1690_s21 }
  0x25   : > { %p256_p13 = scmp.eq.s32.totalorder %s1437_s15, 1  ;;  %p57_p0 = scmp.eq.s32.totalorder %s54_s26, 0 }
  0x26   : > { %p262_p2 = scmp.eq.s32.totalorder %s1661_s18, 1  ;;  %p1018_p5 = scmp.lt.s32.totalorder %s1349_s14, 2 }
  0x27   : > { %p1495_p4 = por %p256_p13, %p66_p8  ;;  %s408_s17 = sand.u32 1, %s1337_s11  }
  0x28   : > { %s1501_s29 = scalar_select %p57_p0, %s1337_s11, %s59_s28  }
  0x29   : > { %p1503_p7 = por %p262_p2, %p72_p10  ;;  %s920_s20 = sshll.u32 %s408_s17, 2 }
  0x2a   : > { %s921_s23 = sshll.u32 %s1345_s13, 2  ;;  %s1679_s0 = sld [smem:[#allocation20_spill]] }
  0x2b   : > { %s412_s3 = scalar_lea.vmem [#allocation2], %s920_s20  ;;  %p1002_p8 = pnand %p1018_p5, %p1480_p11 }
  0x2c   : > { %s421_s18 = sshll.u32 %s412_s3, 4  ;;  %s409_s28 = scalar_lea.sflag [#allocation3], %s408_s17  ;;  %s422_s18 = int_to_ptr.vmem [resolvable:$true] %s421_s18 }
  0x2d   : > { %s1517_s21 = sand.u32 (!%p1445_p3), 1, %s1333_s10  }
  0x2e   : > { %430 = sbr.rel (%p1445_p3) target bundleno = 223 (0xdf), region = 48  ;;  %s1520_s1 = sshll.u32 (!%p1445_p3), %s1517_s21, 2 }
  0x2f   : > { %s433_s3 = scalar_lea.sflag (!%p1445_p3), [#allocation3], %s1517_s21  ;;  %s436_s20 = scalar_lea.vmem (!%p1445_p3), [#allocation2], %s1520_s1 }
  0x30   : > { %s417_s26 = scalar_lea.hbm %s1679_s0, %s921_s23 }
  0x31   : > { %s419_s5 = sshll.u32 %s417_s26, 4  ;;  %s420_s5 = int_to_ptr.hbm [resolvable:$true] %s419_s5 }
  0x32   : > { %1004 = dma.hbm_to_vmem [thread:$0]  (!%p1002_p8), %s420_s5, 64, %s422_s18, %s409_s28  }
  0x33   : > { %1308 = dma.done.wait (%p1486_p12), %s433_s3, 64  }
  0x34   : > { %1310 = vsyncadd (%p1486_p12), %s433_s3, 4294967232 }
  0x35   : > { %1312 = dma.done.wait (%p73_p1), [#allocation6], 512  }
  0x36   : > { %1314 = vsyncadd (%p73_p1), [#allocation6], 4294966784 }
  0x37   : > { %1316 = dma.done.wait (%p73_p1), [#allocation9], 256  }
  0x38   : > { %1318 = vsyncadd (%p73_p1), [#allocation9], 4294967040  ;;  %v966_v0 = vld [vmem:[#allocation5 + $0x8] sm:$0xff]  ;;  %v968_v1 = vld [vmem:[#allocation7 + $0x8] sm:$0xff]  ;;  %vm537_vm0 = vcmask 261120   ;;  %s1537_s5 = sshll.u32 %s1341_s12, 2 }
  0x39   : > { %v970_v2 = vld [vmem:[#allocation8 + $0x8] sm:$0xff]  ;;  %547 = vmatpush.bf16.msra.mxu0 %v966_v0  ;;  %584 = vmatpush.bf16.msra.mxu1 %v968_v1  ;;  %v965_v3 = vld [vmem:[#allocation5] sm:$0xff]  ;;  %v967_v4 = vld [vmem:[#allocation7] sm:$0xff]  ;;  %s1680_s2 = sld [smem:[#allocation22_spill]]  ;;  %s667_s24 = scalar_lea.hbm %s1659_s8, %s1537_s5  ;;  %vm556_vm1 = vcmask 257024  }
  0x3a   : > { %619 = vmatpush.bf16.msra.mxu2 %v970_v2  ;;  %v969_v5 = vld [vmem:[#allocation8] sm:$0xff]  ;;  %v516_v6 = vld [vmem:[%s436_s20] sm:$0xf]  ;;  %s1681_s4 = sld [smem:[#allocation24_spill]]  ;;  %s633_s26 = sand.u32 1, %s1437_s15  }
  0x3b   : > { %s498_s28 = scalar_lea.vmem [#allocation11], %s1520_s1  ;;  %s651_s19 = scalar_lea.hbm %s1658_s7, %s1537_s5  ;;  %v1078_v15 = vld [vmem:[%s1657_s6] ss:$0 sm:$0xff] }
  0x3c   : > { %s1551_s3 = sshll.u32 %s498_s28, 4  ;;  %s1557_s18 = sshll.u32 %s667_s24, 4  ;;  %s670_s3 = int_to_ptr.vmem [resolvable:$true] %s1551_s3  ;;  %s672_s18 = int_to_ptr.hbm [resolvable:$true] %s1557_s18 }
  0x3d   : > { %548 = vmatpush.bf16.msra.mxu0 %v965_v3  ;;  %585 = vmatpush.bf16.msra.mxu1 %v967_v4  ;;  %s491_s25 = scalar_lea.vmem [#allocation10], %s1520_s1  ;;  %s1563_s22 = sshll.u32 %s651_s19, 4  ;;  %s656_s22 = int_to_ptr.hbm [resolvable:$true] %s1563_s22 }
  0x3e   : > { %620 = vmatpush.bf16.msra.mxu2 %v969_v5  ;;  %s1561_s15 = sshll.u32 %s491_s25, 4  ;;  %s683_s20 = scalar_lea.hbm %s1660_s9, %s1537_s5  ;;  %s654_s15 = int_to_ptr.vmem [resolvable:$true] %s1561_s15 }
  0x3f   : > { %v1076_v7 = vld [vmem:[%s1680_s2] ss:$0 sm:$0xff]  ;;  %s1576_s0 = scalar_lea.sflag [#allocation12], %s633_s26  ;;  %s1213_s19 = sshra.s32 %s672_s18, 4  ;;  %s1214_s19 = int_to_ptr.hbm [resolvable:$true] %s1213_s19 }
  0x40   : > { %938 = vmatmul.msk.bf16.vlgmr.msra.gmra.mxu0 %vm537_vm0, %v516_v6  ;;  %947 = vmatmul.msk.bf16.vlgmr.msra.gmra.mxu1 %vm537_vm0, %v516_v6  ;;  %v1077_v8 = vld [vmem:[%s1681_s4] ss:$0 sm:$0xff]  ;;  %s1215_s2 = scalar_lea.hbm %s1214_s19, 4  ;;  %s1219_s4 = scalar_lea.hbm %s1659_s8, 8 }
  0x41   : > { %956 = vmatmul.msk.bf16.vlgmr.msra.gmra.mxu2 %vm537_vm0, %v516_v6  ;;  %p1216_p1 = scmp.ne.s32.totalorder %s1214_s19, %s1215_s2  ;;  %p1220_p10 = scmp.lt.s32.totalorder %s1214_s19, %s1659_s8 }
  0x42   : > { %p1221_p11 = scmp.lt.s32.totalorder %s1219_s4, %s1215_s2 }
  0x43   : > { %p1217_p3 = pnand %p1216_p1, %p1495_p4 }
  0x44   : > { %p1222_p12 = por %p1221_p11, %p1220_p10 }
  0x45   : > { %p1218_p9 = pneg %p1217_p3 }
  0x47   : > { %p1223_p13 = pnand %p1222_p12, %p1218_p9 }
  0xbd   : > { %v550_v9 = vpop.f32.mrf.mxu0  ;;  %v587_v10 = vpop.f32.mrf.mxu1 }
  0xbe   : > { %v551_v11 = vadd.f32 %v1076_v7, %v550_v9  ;;  %v588_v12 = vadd.f32 %v1077_v8, %v587_v10 }
  0xc0   : > { %v554_v13 = vmul.f32 0.35355338, %v551_v11  ;;  %v591_v14 = vpack.c.bf16 %v588_v12, %v588_v12 }
  0xc2   : > { %v555_v16 = vpack.c.bf16 %v554_v13, %v554_v13  ;;  %592 = vst.msk [vmem:[%s498_s28] sm:$0xf] %vm556_vm1, %v591_v14 }
  0xc3   : > { %1226 = shalt.err (!%p1223_p13)
}
  0xc4   : > { %986 = dma.vmem_to_hbm [thread:$0]  (%p1495_p4), %s670_s3, 64, %s672_s18, %s1576_s0   ;;  %v622_v17 = vpop.f32.mrf.mxu2  ;;  %557 = vst.msk [vmem:[%s491_s25] sm:$0xf] %vm556_vm1, %v555_v16 }
  0xc5   : > { %s505_s26 = scalar_lea.vmem [#allocation13], %s1520_s1  ;;  %s1593_s12 = sshll.u32 %s683_s20, 4  ;;  %v623_v18 = vadd.f32 %v1078_v15, %v622_v17  ;;  %v552_v19 = vpop.f32.mrf.mxu0  ;;  %v589_v20 = vpop.f32.mrf.mxu1  ;;  %s688_s12 = int_to_ptr.hbm [resolvable:$true] %s1593_s12 }
  0xc6   : > { %s1591_s28 = sshll.u32 %s505_s26, 4  ;;  %s629_s2 = scalar_lea.sflag [#allocation4], %s1517_s21  ;;  %s686_s28 = int_to_ptr.vmem [resolvable:$true] %s1591_s28 }
  0xc7   : > { %s1241_s4 = sshra.s32 %s656_s22, 4  ;;  %s1247_s1 = scalar_lea.hbm %s1658_s7, 8  ;;  %s1242_s4 = int_to_ptr.hbm [resolvable:$true] %s1241_s4 }
  0xc8   : > { %s1243_s19 = scalar_lea.hbm %s1242_s4, 4  ;;  %p1248_p8 = scmp.lt.s32.totalorder %s1242_s4, %s1658_s7 }
  0xc9   : > { %p1244_p0 = scmp.ne.s32.totalorder %s1242_s4, %s1243_s19  ;;  %p1249_p1 = scmp.lt.s32.totalorder %s1247_s1, %s1243_s19 }
  0xcb   : > { %p1245_p2 = pnand %p1244_p0, %p1495_p4  ;;  %p1250_p3 = por %p1249_p1, %p1248_p8 }
  0xcd   : > { %p1246_p5 = pneg %p1245_p2 }
  0xcf   : > { %p1251_p9 = pnand %p1250_p3, %p1246_p5 }
  0xd1   : > { %1254 = shalt.err (!%p1251_p9)
}
  0xd2   : > { %985 = dma.vmem_to_hbm [thread:$0]  (%p1495_p4), %s654_s15, 64, %s656_s22, %s629_s2   ;;  %v626_v21 = vpack.c.bf16 %v623_v18, %v623_v18 }
  0xd3   : > { %s1269_s21 = sshra.s32 %s688_s12, 4  ;;  %s1275_s5 = scalar_lea.hbm %s1660_s9, 8  ;;  %s1270_s21 = int_to_ptr.hbm [resolvable:$true] %s1269_s21 }
  0xd4   : > { %627 = vst.msk [vmem:[%s505_s26] sm:$0xf] %vm556_vm1, %v626_v21  ;;  %s1271_s20 = scalar_lea.hbm %s1270_s21, 4  ;;  %p1276_p13 = scmp.lt.s32.totalorder %s1270_s21, %s1660_s9 }
  0xd5   : > { %p1272_p10 = scmp.ne.s32.totalorder %s1270_s21, %s1271_s20  ;;  %p1277_p0 = scmp.lt.s32.totalorder %s1275_s5, %s1271_s20 }
  0xd7   : > { %p1273_p11 = pnand %p1272_p10, %p1495_p4  ;;  %p1278_p2 = por %p1277_p0, %p1276_p13 }
  0xd9   : > { %p1274_p12 = pneg %p1273_p11 }
  0xdb   : > { %p1279_p5 = pnand %p1278_p2, %p1274_p12 }
  0xdd   : > { %1282 = shalt.err (!%p1279_p5)
}
  0xde   : > { %987 = dma.vmem_to_hbm [thread:$0]  (%p1495_p4), %s686_s28, 64, %s688_s12, %s1576_s0   ;;  %v624_v22 = vpop.f32.mrf.mxu2 }
  0xdf PF: > { %s699_s15 = sand.u32 1, %s1329_s30   ;;  %p1006_p8 = pnand %p919_p6, %p1503_p7 }
  0xe0   : > { %s700_s22 = scalar_lea.sflag [#allocation4], %s699_s15 }
  0xe1   : > { %p1007_p1 = pneg %p1006_p8 }
  0xe3   : > { %1320 = dma.done.wait (%p1007_p1), %s700_s22, 64  }
  0xe4   : > { %1322 = vsyncadd (%p1007_p1), %s700_s22, 4294967232  ;;  %s1682_s26 = sadd.s32 4294967294, %s1349_s14  }
  0xe5   : > { %s709_s2 = sand.u32 1, %s1682_s26  }
  0xe6   : > { %s710_s3 = scalar_lea.sflag [#allocation12], %s709_s2 }
  0xe7   : > { %1324 = dma.done.wait (%p1007_p1), %s710_s3, 128  }
  0xe8   : > { %1326 = vsyncadd (%p1007_p1), %s710_s3, 4294967168  ;;  %s31_s14 = sadd.s32 1, %s1349_s14   ;;  %s1683_s0 = sld [smem:[#allocation19_spill]] }
  0xe9   : > { %p28_p4 = scmp.ge.s32.totalorder %s31_s14, 4   ;;  %s1684_s30 = smov %s1333_s10 }
  0xea   : > { %s1685_s10 = smov %s1337_s11  ;;  %s1686_s11 = smov %s1501_s29 }
  0xeb   : > { %s1687_s12 = smov %s1345_s13  ;;  %30 = sbr.rel (!%p28_p4) target bundleno = 17 (0x11), region = 149 }
  0xee   : > { %s1688_s13 = smov %s1683_s0 }
  0xf0   :  { %726 = vsyncpa [#allocation3], 1 }
  0xf1   :  { %728 = vsyncpa [#allocation3 + $0x1], 1 }
  0xf2   :  { %729 = vsyncpa [#allocation6], 1 }
  0xf3   :  { %730 = vsyncpa [#allocation9], 1 }
  0xf4   :  { %731 = vsyncpa [#allocation4], 1 }
  0xf5   :  { %733 = vsyncpa [#allocation4 + $0x1], 1 }
  0xf6   :  { %734 = vsyncpa [#allocation12], 1 }
  0xf7   :  { %736 = vsyncpa [#allocation12 + $0x1], 1 }

</bundles_post_ra>
